<compile_context>
chip_gen: v7x
topology: tpu7x:2x2x1
jax: 0.10.0
libtpu: 0.0.40
codegen_flags: <defaults>
</compile_context>

<pallas_src>
import jax
import jax.numpy as jnp
from jax.experimental import pallas as pl
from jax.experimental.pallas import tpu as pltpu


def _round_up(x, m):
    return ((x + m - 1) // m) * m


def _pad_to(a, shape):
    pads = [(0, t - s) for s, t in zip(a.shape, shape)]
    return jnp.pad(a, pads)


def _pick_tn(n, target):
    """Largest divisor of n that is <= target and a multiple of 8 (sublane
    constraint for the second-to-last block dim).  Falls back to n itself
    (block dim == full array dim is always legal)."""
    if n <= target:
        return n
    for d in range(min(target, n), 7, -1):
        if n % d == 0 and d % 8 == 0:
            return d
    return n


def _patch_embed_kernel(xp_ref, wpe_ref, bpe_ref, e_ref):
    """e = xp @ wpe + bpe for one batch element.

    xp_ref : (1, N, Cpp_pad)  f32   flattened patches
    wpe_ref: (Cpp_pad, F_pad) bf16
    bpe_ref: (1, F_pad)       f32
    e_ref  : (1, N, F_pad)    bf16  patch embedding (stage-2 input)
    """
    x = xp_ref[0].astype(jnp.bfloat16)
    e = jnp.dot(x, wpe_ref[...], preferred_element_type=jnp.float32)
    e_ref[0] = (e + bpe_ref[...]).astype(e_ref.dtype)


def _sketch_decode_kernel(sk_ref, e_ref, wdec_ref, bdec_ref, out_ref):
    """z = sk_tile @ e ; y = z @ wdec + bdec for one (batch, token-tile).

    sk_ref  : (1, TN, N)        original dtype (f32 or bf16) -> cast in VMEM
    e_ref   : (1, N, F_pad)     bf16  (same block for every token tile)
    wdec_ref: (F_pad, Cout_pad) bf16
    bdec_ref: (1, Cout_pad)     f32
    out_ref : (1, TN, Cout_pad) bf16  lane-dense store
    """
    s = sk_ref[0].astype(jnp.bfloat16)                               # (TN, N)
    z = jnp.dot(s, e_ref[0], preferred_element_type=jnp.float32)     # (TN, F_pad)
    y = jnp.dot(z.astype(jnp.bfloat16), wdec_ref[...],
                preferred_element_type=jnp.float32)                  # (TN, Cout_pad)
    out_ref[0] = (y + bdec_ref[...]).astype(out_ref.dtype)


def ropim_forward(x, sp_sketch_invsketch, params, *, patch_size,
                  encoder_stride, tn=None):
    """x: (B, C, H, W) NCHW.  sp_sketch_invsketch: (B, N, N).

    Returns the reconstructed image (B, 3, Hp*r, Wp*r) in x.dtype.
    """
    B, C, H, W = x.shape
    p, r = patch_size, encoder_stride
    Hp, Wp = H // p, W // p
    N = Hp * Wp
    Cpp = C * p * p

    wpe, bpe, wdec, bdec = params
    F = wpe.shape[1]
    Cout = wdec.shape[1]          # r*r*3

    # MXU-native / lane-dense padding of the small channel dims only.
    Cpp_pad = _round_up(Cpp, 128)
    F_pad = _round_up(F, 128)
    Cout_pad = _round_up(Cout, 128)

    # --- glue: NCHW image -> flattened patch tokens (B, N, Cpp_pad); small.
    xp = x.reshape(B, C, Hp, p, Wp, p)
    xp = xp.transpose(0, 2, 4, 1, 3, 5).reshape(B, N, Cpp)
    xp = _pad_to(xp, (B, N, Cpp_pad))

    wpe_p = _pad_to(wpe, (Cpp_pad, F_pad)).astype(jnp.bfloat16)
    bpe_p = _pad_to(bpe, (1, F_pad)).astype(jnp.float32)
    wdec_p = _pad_to(wdec, (F_pad, Cout_pad)).astype(jnp.bfloat16)
    bdec_p = _pad_to(bdec, (1, Cout_pad)).astype(jnp.float32)

    # ---------------- stage 1: patch embedding (tiny) ----------------------
    e = pl.pallas_call(
        _patch_embed_kernel,
        out_shape=jax.ShapeDtypeStruct((B, N, F_pad), jnp.bfloat16),
        grid_spec=pltpu.PrefetchScalarGridSpec(
            num_scalar_prefetch=0,
            grid=(B,),
            in_specs=[
                pl.BlockSpec((1, N, Cpp_pad), lambda b: (b, 0, 0)),
                pl.BlockSpec((Cpp_pad, F_pad), lambda b: (0, 0)),
                pl.BlockSpec((1, F_pad), lambda b: (0, 0)),
            ],
            out_specs=pl.BlockSpec((1, N, F_pad), lambda b: (b, 0, 0)),
        ),
        compiler_params=pltpu.CompilerParams(
            dimension_semantics=("parallel",)),
    )(xp, wpe_p, bpe_p)

    # ---------------- stage 2: sketch apply + decoder 1x1 conv -------------
    if tn is None:
        tn = 512                      # amortizes per-step pipeline overhead
    tn = _pick_tn(N, int(tn))
    num_nt = N // tn

    sk = sp_sketch_invsketch          # streamed as-is: no pad, no pre-cast
    sk_item = jnp.dtype(sk.dtype).itemsize

    flops = B * (2 * N * N * F_pad + 2 * N * F_pad * Cout_pad)
    bytes_accessed = (sk.size * sk_item + e.size * 2
                      + wdec_p.size * 2 + bdec_p.size * 4
                      + B * N * Cout_pad * 2)

    # Explicit VMEM budget (double-buffered sk is the big consumer).
    vmem_need = (2 * tn * N * sk_item            # sk tiles (x2 buffers)
                 + 2 * N * F_pad * 2             # e (resident per batch elem)
                 + F_pad * Cout_pad * 2 + 8 * Cout_pad * 4
                 + 2 * tn * Cout_pad * 2)        # output tiles
    vmem_limit = int(min(max(2 * vmem_need + (2 << 20), 16 << 20), 64 << 20))

    y = pl.pallas_call(
        _sketch_decode_kernel,
        out_shape=jax.ShapeDtypeStruct((B, N, Cout_pad), jnp.bfloat16),
        grid_spec=pltpu.PrefetchScalarGridSpec(
            num_scalar_prefetch=0,
            grid=(B, num_nt),
            in_specs=[
                pl.BlockSpec((1, tn, N), lambda b, nt: (b, nt, 0)),
                pl.BlockSpec((1, N, F_pad), lambda b, nt: (b, 0, 0)),
                pl.BlockSpec((F_pad, Cout_pad), lambda b, nt: (0, 0)),
                pl.BlockSpec((1, Cout_pad), lambda b, nt: (0, 0)),
            ],
            out_specs=pl.BlockSpec((1, tn, Cout_pad),
                                   lambda b, nt: (b, nt, 0)),
        ),
        compiler_params=pltpu.CompilerParams(
            dimension_semantics=("parallel", "parallel"),
            vmem_limit_bytes=vmem_limit),
        cost_estimate=pl.CostEstimate(flops=flops, transcendentals=0,
                                      bytes_accessed=bytes_accessed),
    )(sk, e, wdec_p, bdec_p)                     # (B, N, Cout_pad) bf16

    y = y[:, :, :Cout]                           # drop channel padding

    # --- glue: PixelShuffle(r).  Token channel index = c*r*r + i*r + j,
    # out[b, c, h*r+i, w*r+j] = y[b, h*Wp + w, c*r*r + i*r + j]  ---
    x_rec = y.reshape(B, Hp, Wp, 3, r, r)
    x_rec = x_rec.transpose(0, 3, 1, 4, 2, 5).reshape(B, 3, Hp * r, Wp * r)
    return x_rec.astype(x.dtype)


def _reference_forward(x, sk, params, *, patch_size, encoder_stride):
    """Pure-JAX f32 reference of the identical math (correctness check)."""
    B, C, H, W = x.shape
    p, r = patch_size, encoder_stride
    Hp, Wp = H // p, W // p
    N, Cpp = Hp * Wp, C * p * p
    wpe, bpe, wdec, bdec = params
    xp = x.reshape(B, C, Hp, p, Wp, p).transpose(0, 2, 4, 1, 3, 5).reshape(B, N, Cpp)
    e = jnp.einsum('bnc,cf->bnf', xp, wpe) + bpe
    z = jnp.einsum('bnm,bmf->bnf', sk, e)
    y = jnp.einsum('bnf,fo->bno', z, wdec) + bdec
    x_rec = y.reshape(B, Hp, Wp, 3, r, r).transpose(0, 3, 1, 4, 2, 5)
    return x_rec.reshape(B, 3, Hp * r, Wp * r)


if __name__ == "__main__":
    # Small, deterministic config.
    B, C, H, W = 2, 3, 32, 32          # NCHW input, in_chans = 3
    patch_size = 4
    encoder_stride = 4                  # decoder out channels = 4*4*3 = 48
    num_features = 32                   # encoder.num_features
    Hp, Wp = H // patch_size, W // patch_size
    N = Hp * Wp                         # 64 patch tokens
    Cpp = C * patch_size * patch_size   # 48
    Cout = encoder_stride ** 2 * 3      # 48

    key = jax.random.PRNGKey(0)
    kx, ksk, k1, k2, k3, k4 = jax.random.split(key, 6)

    x = jax.random.normal(kx, (B, C, H, W), dtype=jnp.float32)
    sp_sketch_invsketch = jax.random.normal(ksk, (B, N, N), dtype=jnp.float32) / N

    # Deterministic synthetic parameters (encoder patch-embed + decoder conv).
    wpe = jax.random.normal(k1, (Cpp, num_features), dtype=jnp.float32) * 0.02
    bpe = jax.random.normal(k2, (1, num_features), dtype=jnp.float32) * 0.02
    wdec = jax.random.normal(k3, (num_features, Cout), dtype=jnp.float32) * 0.02
    bdec = jax.random.normal(k4, (1, Cout), dtype=jnp.float32) * 0.02
    params = (wpe, bpe, wdec, bdec)

    # tn=16 so the demo exercises multiple token tiles per batch element
    # (production default targets 512-row tiles that divide N).
    out = ropim_forward(x, sp_sketch_invsketch, params,
                        patch_size=patch_size, encoder_stride=encoder_stride,
                        tn=16)
    out = jax.block_until_ready(out)

    ref = _reference_forward(x, sp_sketch_invsketch, params,
                             patch_size=patch_size,
                             encoder_stride=encoder_stride)
    assert out.shape == (B, 3, H, W), out.shape
    # bf16 MXU operands / bf16 kernel output with f32 accumulation.
    assert jnp.allclose(out, ref, atol=1e-2, rtol=1e-2), "mismatch vs reference"

    # TODO(synk): the real ROPIM encoder (e.g. Swin/ViT backbone) is an injected
    # module and is replaced here by a deterministic patch-embed + sketch apply.
    print("KERNEL_OK")
</pallas_src>

<mosaic_0001>
module attributes {stable_mosaic.version = 11 : i64} {
  func.func @_patch_embed_kernel(%arg0: i32, %arg1: memref<1x64x128xf32, #tpu.memory_space<vmem>>, %arg2: memref<128x128xbf16, #tpu.memory_space<vmem>>, %arg3: memref<1x128xf32, #tpu.memory_space<vmem>>, %arg4: memref<1x64x128xbf16, #tpu.memory_space<vmem>>) attributes {dimension_semantics = [#tpu.dimension_semantics<parallel>], iteration_bounds = array<i64: 2>, scalar_prefetch = 0 : i64, scratch_operands = 0 : i64, tpu.core_type = #tpu.core_type<tc>, window_params = [{transform_indices = @transform_0, window_bounds = array<i64: 1, 64, 128>}, {pipeline_mode = #tpu.pipeline_mode<synchronous>, transform_indices = @transform_1, window_bounds = array<i64: 128, 128>}, {pipeline_mode = #tpu.pipeline_mode<synchronous>, transform_indices = @transform_2, window_bounds = array<i64: 1, 128>}, {transform_indices = @transform_3, window_bounds = array<i64: 1, 64, 128>}]} {
    %c0 = arith.constant 0 : index
    %c0_0 = arith.constant 0 : index
    %c0_1 = arith.constant 0 : index
    %0 = vector.load %arg1[%c0, %c0_0, %c0_1] : memref<1x64x128xf32, #tpu.memory_space<vmem>>, vector<1x64x128xf32>
    %1 = vector.shape_cast %0 : vector<1x64x128xf32> to vector<64x128xf32>
    %2 = arith.truncf %1 : vector<64x128xf32> to vector<64x128xbf16>
    %c0_2 = arith.constant 0 : index
    %c0_3 = arith.constant 0 : index
    %3 = vector.load %arg2[%c0_2, %c0_3] : memref<128x128xbf16, #tpu.memory_space<vmem>>, vector<128x128xbf16>
    %cst = arith.constant dense<0.000000e+00> : vector<64x128xf32>
    %4 = tpu.matmul %2, %3, %cst {dimension_numbers = #tpu.dot_dimension_numbers<[1], [0], [0], [1], [0, 0, 1, 1], [], []>} : vector<64x128xbf16>, vector<128x128xbf16>, vector<64x128xf32> -> vector<64x128xf32>
    %c0_4 = arith.constant 0 : index
    %c0_5 = arith.constant 0 : index
    %5 = vector.load %arg3[%c0_4, %c0_5] : memref<1x128xf32, #tpu.memory_space<vmem>>, vector<1x128xf32>
    %6 = vector.broadcast %5 : vector<1x128xf32> to vector<64x128xf32>
    %7 = arith.addf %4, %6 : vector<64x128xf32>
    %8 = arith.truncf %7 : vector<64x128xf32> to vector<64x128xbf16>
    %c0_6 = arith.constant 0 : index
    %c0_7 = arith.constant 0 : index
    %c0_8 = arith.constant 0 : index
    %9 = vector.load %arg4[%c0_6, %c0_7, %c0_8] : memref<1x64x128xbf16, #tpu.memory_space<vmem>>, vector<1x64x128xbf16>
    %10 = vector.shape_cast %9 : vector<1x64x128xbf16> to vector<64x128xbf16>
    %11 = vector.shape_cast %8 : vector<64x128xbf16> to vector<1x64x128xbf16>
    tpu.vector_store %arg4[%c0_6, %c0_7, %c0_8], %11 {strides = array<i32>} : memref<1x64x128xbf16, #tpu.memory_space<vmem>>, vector<1x64x128xbf16>,
    return
  }
  func.func @transform_0(%arg0: i32) -> (i32, i32, i32) {
    %c0_i32 = arith.constant 0 : i32
    %c0_i32_0 = arith.constant 0 : i32
    %c0_i32_1 = arith.constant 0 : i32
    return %arg0, %c0_i32, %c0_i32_0 : i32, i32, i32
  }
  func.func @transform_1(%arg0: i32) -> (i32, i32) {
    %c0_i32 = arith.constant 0 : i32
    %c0_i32_0 = arith.constant 0 : i32
    %c0_i32_1 = arith.constant 0 : i32
    return %c0_i32, %c0_i32_0 : i32, i32
  }
  func.func @transform_2(%arg0: i32) -> (i32, i32) {
    %c0_i32 = arith.constant 0 : i32
    %c0_i32_0 = arith.constant 0 : i32
    %c0_i32_1 = arith.constant 0 : i32
    return %c0_i32, %c0_i32_0 : i32, i32
  }
  func.func @transform_3(%arg0: i32) -> (i32, i32, i32) {
    %c0_i32 = arith.constant 0 : i32
    %c0_i32_0 = arith.constant 0 : i32
    %c0_i32_1 = arith.constant 0 : i32
    return %arg0, %c0_i32, %c0_i32_0 : i32, i32, i32
  }
}

</mosaic_0001>

<bundles_post_ra>
// kernel: tpu_custom_call.1
= control target key start
LH: loop header
LB: loop body
LE: loop exit
PB: predicated region body
PF: predicated region fallthrough
CT: control target
= control target key end

     0   :  { %8 = vsyncpa [#allocation3], 0  ;;  %s1053_s0 = inlined_call_operand.hbm [shape: f32[2,64,128], index: 0, kind: input, shape index: {}]   ;;  %s1054_s1 = inlined_call_operand.hbm [shape: bf16[128,128], index: 1, kind: input, shape index: {}]   ;;  %s1055_s2 = inlined_call_operand.vmem [shape: f32[1,128], index: 2, kind: input, shape index: {}]   ;;  %s1056_s3 = inlined_call_operand.hbm [shape: bf16[2,64,128], index: 3, kind: output, shape index: {}]  }
   0x1   :  { %10 = vsyncpa [#allocation3 + $0x1], 0 }
   0x2   :  { %11 = vsyncpa [#allocation6], 0 }
   0x3   :  { %12 = vsyncpa [#allocation4], 0 }
   0x4   :  { %14 = vsyncpa [#allocation4 + $0x1], 0  ;;  %s838_s12 = smov 0   ;;  %s840_s13 = smov 0  }
   0x5   :  { %s842_s14 = smov 0   ;;  %s844_s15 = smov 0  }
   0x6 LB: > { %s859_s16 = sadd.s32 4294967295, %s807_s15   ;;  %s490_s17 = sadd.s32 4294967294, %s807_s15   ;;  %s807_s15 = sphi %s844_s15, %s1076_s15   ;;  %s803_s14 = sphi %s842_s14, %s1075_s14   ;;  %s799_s13 = sphi %s840_s13, %s1074_s13   ;;  %s795_s12 = sphi %s838_s12, %s1073_s12  }
   0x7   : > { %p40_p0 = scmp.ne.s32.totalorder %s799_s13, %s795_s12  ;;  %p1057_p1 = scmp.eq.s32.totalorder %s859_s16, 0 }
   0x8   : > { %p112_p3 = scmp.eq.s32.totalorder %s490_s17, 1  ;;  %p491_p5 = scmp.ge.s32.totalorder %s807_s15, 1 }
   0x9   : > { %p868_p4 = por %p1057_p1, %p40_p0  ;;  %p119_p7 = scmp.lt.s32.totalorder %s807_s15, 3 }
   0xa   : > { %p873_p6 = por %p112_p3, %p40_p0  ;;  %s809_s21 = smov [#allocation5]  }
   0xb   : > { %s1060_s18 = scalar_select %p868_p4, 1, 0 }
   0xc   : > { %s1061_s19 = scalar_select %p873_p6, 1, 0 }
   0xd   : > { %p878_p8 = pnand %p491_p5, %p119_p7  ;;  %s131_s22 = sshll.u32 %s809_s21, 4  ;;  %s882_s22 = int_to_ptr.vmem [resolvable:$true] %s131_s22 }
   0xe   : > { %s894_s24 = sadd.s32 1, %s807_s15   ;;  %s27_s25 = sadd.s32 1, %s803_s14 }
   0xf   : > { %s1062_s20 = scalar_select %p878_p8, 1, 0 }
  0x10   : > { %p616_p9 = pneg %p878_p8  ;;  %s24_s26 = ssub.s32 %s807_s15, %s894_s24 }
  0x11   : > { %s679_s29 = scalar_lea.hbm %s1054_s1, 1024 }
  0x12   : > { %p889_p11 = pnand %p616_p9, %p1057_p1  ;;  %p680_p12 = scmp.ne.s32.totalorder %s1054_s1, %s679_s29 }
  0x13   : > { %p686_p5 = scmp.lt.u32.totalorder %s679_s29, %s1054_s1 }
  0x14   : > { %p681_p13 = pneg %p889_p11 }
  0x16   : > { %p682_p0 = pnand %p681_p13, %p680_p12 }
  0x18   : > { %p683_p3 = pneg %p682_p0 }
  0x1a   : > { %p688_p7 = pnand %p686_p5, %p683_p3 }
  0x1c   : > { %691 = shalt.err (!%p688_p7)
}
  0x1d   : > { %s692_s7 = scalar_lea.vmem %s882_s22, 1024  ;;  %p700_p2 = scmp.lt.s32.totalorder %s882_s22, %s882_s22 }
  0x1e   : > { %p693_p9 = scmp.ne.s32.totalorder %s882_s22, %s692_s7  ;;  %p701_p6 = scmp.lt.s32.totalorder %s692_s7, %s692_s7 }
  0x20   : > { %p695_p10 = pnand %p693_p9, %p681_p13  ;;  %p702_p4 = por %p701_p6, %p700_p2 }
  0x22   : > { %p696_p1 = pneg %p695_p10 }
  0x24   : > { %p703_p8 = pnand %p702_p4, %p696_p1 }
  0x26   : > { %706 = shalt.err (!%p703_p8)
}
  0x27   : > { %s810_s8 = smov 64   ;;  %s811_s9 = smov 4  }
  0x28   : > { %619 = dma.hbm_to_vmem [thread:$0]  (!%p889_p11), %s1054_s1, 1024, %s882_s22, [#allocation6], %s810_s8, %s810_s8, %s811_s9  }
  0x29   : > { %p25_p2 = scmp.eq.s32.totalorder %s24_s26, 0  ;;  %p34_p1 = scmp.ne.s32.totalorder %s803_s14, %s799_s13 }
  0x2a   : > { %p35_p4 = scmp.eq.s32.totalorder %s807_s15, 0  ;;  %p629_p6 = scmp.lt.s32.totalorder %s807_s15, 2 }
  0x2b   : > { %s925_s17 = scalar_select %p25_p2, %s803_s14, %s27_s25  }
  0x2c   : > { %p36_p8 = por %p35_p4, %p34_p1  ;;  %p1064_p10 = scmp.eq.s32.totalorder %s859_s16, 1 }
  0x2d   : > { %s148_s27 = sand.u32 1, %s803_s14   ;;  %s523_s28 = sshll.u32 %s807_s15, 10 }
  0x2e   : > { %p929_p12 = por %p1064_p10, %p34_p1  ;;  %s494_s29 = sshll.u32 %s148_s27, 6 }
  0x2f   : > { %s938_s4 = scalar_lea.hbm %s1053_s0, %s523_s28  ;;  %s152_s22 = scalar_lea.vmem [#allocation2], %s494_s29 }
  0x30   : > { %s159_s25 = sshll.u32 %s152_s22, 4  ;;  %p940_p11 = pnand %p629_p6, %p36_p8  ;;  %s944_s25 = int_to_ptr.vmem [resolvable:$true] %s159_s25 }
  0x31   : > { %s946_s5 = scalar_lea.sflag [#allocation3], %s148_s27  ;;  %s707_s6 = scalar_lea.hbm %s938_s4, 1024 }
  0x32   : > { %p708_p13 = scmp.ne.s32.totalorder %s938_s4, %s707_s6  ;;  %p709_p0 = pneg %p940_p11 }
  0x33   : > { %s712_s9 = scalar_lea.hbm %s1053_s0, 2048  ;;  %p713_p7 = scmp.lt.u32.totalorder %s938_s4, %s1053_s0 }
  0x34   : > { %p710_p3 = pnand %p709_p0, %p708_p13  ;;  %p714_p9 = scmp.lt.u32.totalorder %s712_s9, %s707_s6 }
  0x35   : > { %p716_p1 = scmp.lt.u32.totalorder %s707_s6, %s938_s4 }
  0x36   : > { %p711_p5 = pneg %p710_p3  ;;  %p715_p2 = por %p714_p9, %p713_p7 }
  0x38   : > { %p717_p4 = por %p716_p1, %p715_p2 }
  0x3a   : > { %p718_p6 = pnand %p717_p4, %p711_p5 }
  0x3c   : > { %721 = shalt.err (!%p718_p6)
}
  0x3d   : > { %s722_s27 = scalar_lea.vmem %s944_s25, 1024  ;;  %s812_s28 = smov [#allocation2]  }
  0x3e   : > { %p723_p8 = scmp.ne.s32.totalorder %s944_s25, %s722_s27  ;;  %s727_s29 = sshll.u32 %s812_s28, 4  ;;  %s728_s29 = int_to_ptr.vmem [resolvable:$false] %s727_s29 }
  0x3f   : > { %s729_s23 = scalar_lea.vmem %s728_s29, 2048  ;;  %p730_p3 = scmp.lt.s32.totalorder %s944_s25, %s728_s29 }
  0x40   : > { %p725_p10 = pnand %p723_p8, %p709_p0  ;;  %p731_p7 = scmp.lt.s32.totalorder %s729_s23, %s722_s27 }
  0x42   : > { %p726_p13 = pneg %p725_p10  ;;  %p732_p9 = por %p731_p7, %p730_p3 }
  0x44   : > { %p733_p2 = pnand %p732_p9, %p726_p13 }
  0x46   : > { %736 = shalt.err (!%p733_p2)
}
  0x47   : > { %s813_s30 = smov 128   ;;  %s814_s22 = smov 8  }
  0x48   : > { %623 = dma.hbm_to_vmem [thread:$0]  (!%p940_p11), %s938_s4, 1024, %s944_s25, %s946_s5, %s813_s30, %s813_s30, %s814_s22  }
  0x49   : > { %p1067_p0 = scmp.ne.s32.totalorder %s1062_s20, 0 }
  0x4a   : > { %s977_s6 = sand.u32 (!%p1067_p0), 1, %s799_s13   ;;  %p1068_p5 = scmp.ne.s32.totalorder (!%p1067_p0), %s1060_s18, 0 }
  0x4b   : > { %171 = sbr.rel (%p1067_p0) target bundleno = 353 (0x161), region = 32  ;;  %s498_s7 = sshll.u32 (!%p1067_p0), %s977_s6, 6 }
  0x4c   : > { %s174_s8 = scalar_lea.sflag (!%p1067_p0), [#allocation3], %s977_s6  ;;  %s981_s9 = scalar_lea.vmem (!%p1067_p0), [#allocation2], %s498_s7 }
  0x52   : > { %782 = dma.done.wait (%p1068_p5), %s174_s8, 1024  }
  0x53   : > { %784 = vsyncadd (%p1068_p5), %s174_s8, 4294966272  ;;  %p1069_p11 = scmp.eq.s32.totalorder %s859_s16, 0 }
  0x55   : > { %786 = dma.done.wait (%p1069_p11), [#allocation6], 1024   ;;  %p1070_p1 = pmov %p1069_p11 }
  0x56   : > { %v671_v0 = vld [vmem:[#allocation5] sm:$0xff]   ;;  %v672_v1 = vld [vmem:[#allocation5 + $0x8] sm:$0xff]   ;;  %v673_v2 = vld [vmem:[#allocation5 + $0x10] sm:$0xff]   ;;  %s500_s18 = sshll.u32 %s977_s6, 5  ;;  %s532_s5 = sshll.u32 %s859_s16, 9 }
  0x57   : > { %788 = vsyncadd (%p1070_p1), [#allocation6], 4294966272  ;;  %568 = vmatprep.subr.bf16.mxu0 %v671_v0  ;;  %592 = vmatprep.subr.bf16.mxu1 %v671_v0  ;;  %v674_v3 = vld [vmem:[#allocation5 + $0x18] sm:$0xff]   ;;  %v205_v4 = vld [vmem:[%s981_s9] sm:$0xff]  ;;  %s203_s25 = scalar_lea.vmem [#allocation7], %s500_s18  ;;  %s1009_s11 = scalar_lea.hbm %s1056_s3, %s532_s5 }
  0x58   : > { %569 = vmatpush3.bf16.msra.mxu0 %v671_v0  ;;  %600 = vmatpush3.bf16.msra.mxu1 %v671_v0  ;;  %v206_v5 = vld [vmem:[%s981_s9 + $0x8] sm:$0xff]  ;;  %v209_v6 = vld [vmem:[%s981_s9 + $0x20] sm:$0xff]  ;;  %v677_v12 = vld [vmem:[#allocation5 + $0x30] sm:$0xff]   ;;  %s407_s26 = sshll.u32 %s203_s25, 4  ;;  %s394_s27 = scalar_lea.sflag [#allocation4], %s977_s6  ;;  %s1004_s26 = int_to_ptr.vmem [resolvable:$true] %s407_s26 }
  0x59   : > { %570 = vmatprep.subr.bf16.mxu0 %v672_v1  ;;  %593 = vmatprep.subr.bf16.mxu1 %v672_v1  ;;  %v213_v7 = vpack.c.bf16 %v206_v5, %v205_v4  ;;  %v210_v8 = vld [vmem:[%s981_s9 + $0x28] sm:$0xff]  ;;  %v675_v10 = vld [vmem:[#allocation5 + $0x20] sm:$0xff]   ;;  %v678_v13 = vld [vmem:[#allocation5 + $0x38] sm:$0xff]   ;;  %s737_s28 = scalar_lea.vmem %s1004_s26, 512  ;;  %s815_s29 = smov [#allocation7]  }
  0x5a   : > { %v215_v9 = vpack.c.bf16 %v210_v8, %v209_v6  ;;  %v676_v11 = vld [vmem:[#allocation5 + $0x28] sm:$0xff]   ;;  %v207_v14 = vld [vmem:[%s981_s9 + $0x10] sm:$0xff]  ;;  %v208_v15 = vld [vmem:[%s981_s9 + $0x18] sm:$0xff]  ;;  %p738_p4 = scmp.ne.s32.totalorder %s1004_s26, %s737_s28  ;;  %s741_s23 = sshll.u32 %s815_s29, 4  ;;  %s742_s23 = int_to_ptr.vmem [resolvable:$false] %s741_s23 }
  0x5b   : > { %584 = vmatprep.mubr.bf16.mxu0 %v213_v7  ;;  %v211_v16 = vld [vmem:[%s981_s9 + $0x30] sm:$0xff]  ;;  %v212_v17 = vld [vmem:[%s981_s9 + $0x38] sm:$0xff]  ;;  %v214_v18 = vpack.c.bf16 %v208_v15, %v207_v14  ;;  %v501_v21 = vld [vmem:[%s1055_s2] ss:$0 sm:$0xff]  ;;  %s743_s30 = scalar_lea.vmem %s742_s23, 1024  ;;  %p744_p10 = scmp.lt.s32.totalorder %s1004_s26, %s742_s23 }
  0x5c   : > { %571 = vmatpush3.bf16.msra.mxu0 %v672_v1  ;;  %601 = vmatpush3.bf16.msra.mxu1 %v672_v1  ;;  %v216_v19 = vpack.c.bf16 %v212_v17, %v211_v16  ;;  %p739_p6 = pnand %p738_p4, %p929_p12  ;;  %p745_p13 = scmp.lt.s32.totalorder %s743_s30, %s737_s28 }
  0x5d   : > { %572 = vmatprep.subr.bf16.mxu0 %v673_v2  ;;  %594 = vmatprep.subr.bf16.mxu1 %v673_v2 }
  0x5e   : > { %588 = vmatprep.mubr.bf16.mxu1 %v215_v9  ;;  %p740_p8 = pneg %p739_p6  ;;  %p746_p3 = por %p745_p13, %p744_p10 }
  0x60   : > { %573 = vmatpush3.bf16.msra.mxu0 %v673_v2  ;;  %602 = vmatpush3.bf16.msra.mxu1 %v673_v2  ;;  %p747_p7 = pnand %p746_p3, %p740_p8 }
  0x61   : > { %574 = vmatprep.subr.bf16.mxu0 %v674_v3  ;;  %595 = vmatprep.subr.bf16.mxu1 %v674_v3 }
  0x64   : > { %575 = vmatpush3.bf16.msra.mxu0 %v674_v3  ;;  %603 = vmatpush3.bf16.msra.mxu1 %v674_v3 }
  0x65   : > { %576 = vmatprep.subr.bf16.mxu0 %v675_v10  ;;  %596 = vmatprep.subr.bf16.mxu1 %v675_v10 }
  0x68   : > { %577 = vmatpush3.bf16.msra.mxu0 %v675_v10  ;;  %604 = vmatpush3.bf16.msra.mxu1 %v675_v10 }
  0x69   : > { %578 = vmatprep.subr.bf16.mxu0 %v676_v11  ;;  %597 = vmatprep.subr.bf16.mxu1 %v676_v11 }
  0x6c   : > { %579 = vmatpush3.bf16.msra.mxu0 %v676_v11  ;;  %605 = vmatpush3.bf16.msra.mxu1 %v676_v11 }
  0x6d   : > { %580 = vmatprep.subr.bf16.mxu0 %v677_v12  ;;  %598 = vmatprep.subr.bf16.mxu1 %v677_v12 }
  0x70   : > { %581 = vmatpush3.bf16.msra.mxu0 %v677_v12  ;;  %606 = vmatpush3.bf16.msra.mxu1 %v677_v12 }
  0x71   : > { %582 = vmatprep.subr.bf16.mxu0 %v678_v13  ;;  %599 = vmatprep.subr.bf16.mxu1 %v678_v13 }
  0x74   : > { %583 = vmatpush3.bf16.msra.mxu0 %v678_v13  ;;  %607 = vmatpush3.bf16.msra.mxu1 %v678_v13 }
  0x77   : > { %585 = vmatmul.mubr.bf16.vlgmr.msra.gmra.mrb[0].mxu0 %v214_v18  ;;  %589 = vmatmul.mubr.bf16.vlgmr.msra.gmra.mrb[0].mxu1 %v216_v19 }
 0x14a   : > { %v586_v20 = vpop.f32.mrb[0].mxu0  ;;  %v590_v22 = vpop.f32.mrb[0].mxu1 }
 0x14b   : > { %v322_v23 = vpop.f32.mrb[1].mxu0  ;;  %v338_v24 = vpop.f32.mrb[1].mxu1  ;;  %v331_v27 = vadd.f32 %v586_v20, %v501_v21  ;;  %v347_v28 = vadd.f32 %v590_v22, %v501_v21 }
 0x14c   : > { %v587_v25 = vpop.f32.mrb[2].mxu0  ;;  %v591_v26 = vpop.f32.mrb[2].mxu1  ;;  %v323_v33 = vadd.f32 %v501_v21, %v322_v23  ;;  %v339_v34 = vadd.f32 %v501_v21, %v338_v24 }
 0x14d   : > { %v334_v29 = vadd.f32 %v587_v25, %v501_v21  ;;  %v350_v30 = vadd.f32 %v591_v26, %v501_v21  ;;  %v325_v31 = vpop.f32.mrb[3].mxu0  ;;  %v341_v32 = vpop.f32.mrb[3].mxu1 }
 0x14e   : > { %v326_v35 = vadd.f32 %v501_v21, %v325_v31  ;;  %v342_v36 = vadd.f32 %v501_v21, %v341_v32 }
 0x14f   : > { %v541_v37 = vpack.c.bf16 %v334_v29, %v331_v27  ;;  %v551_v38 = vpack.c.bf16 %v350_v30, %v347_v28 }
 0x150   : > { %v536_v39 = vpack.c.bf16 %v326_v35, %v323_v33  ;;  %v546_v40 = vpack.c.bf16 %v342_v36, %v339_v34 }
 0x151   : > { %553 = vst [vmem:[%s203_s25 + $0x8] sm:$0xff] %v541_v37   ;;  %555 = vst [vmem:[%s203_s25 + $0x18] sm:$0xff] %v551_v38  }
 0x152   : > { %537 = vst [vmem:[%s203_s25] sm:$0xff] %v536_v39   ;;  %554 = vst [vmem:[%s203_s25 + $0x10] sm:$0xff] %v546_v40  }
 0x153   : > { %750 = shalt.err (!%p747_p7)
}
 0x154   : > { %s751_s22 = scalar_lea.hbm %s1009_s11, 512  ;;  %s755_s9 = scalar_lea.hbm %s1056_s3, 1024 }
 0x155   : > { %p752_p9 = scmp.ne.s32.totalorder %s1009_s11, %s751_s22  ;;  %p756_p5 = scmp.lt.u32.totalorder %s1009_s11, %s1056_s3 }
 0x156   : > { %p757_p11 = scmp.lt.u32.totalorder %s755_s9, %s751_s22  ;;  %p759_p4 = scmp.lt.u32.totalorder %s751_s22, %s1009_s11 }
 0x157   : > { %p753_p2 = pnand %p752_p9, %p929_p12 }
 0x158   : > { %p758_p1 = por %p757_p11, %p756_p5 }
 0x159   : > { %p754_p0 = pneg %p753_p2 }
 0x15a   : > { %p760_p6 = por %p759_p4, %p758_p1 }
 0x15c   : > { %p761_p8 = pnand %p760_p6, %p754_p0 }
 0x15e   : > { %764 = shalt.err (!%p761_p8)
}
 0x15f   : > { %s816_s4 = smov 64   ;;  %s817_s25 = smov 4  }
 0x160   : > { %614 = dma.vmem_to_hbm [thread:$0]  (%p929_p12), %s1004_s26, 512, %s1009_s11, %s394_s27, %s816_s4, %s816_s4, %s817_s25  }
 0x161 PF: > { %s422_s5 = sand.u32 1, %s795_s12   ;;  %p1071_p10 = scmp.ne.s32.totalorder %s1061_s19, 0 }
 0x162   : > { %p1072_p13 = scmp.ge.s32.totalorder %s807_s15, 2  ;;  %s423_s10 = scalar_lea.sflag [#allocation4], %s422_s5 }
 0x164   : > { %p625_p3 = pnand %p1072_p13, %p1071_p10 }
 0x166   : > { %790 = dma.done.wait (!%p625_p3), %s423_s10, 512  }
 0x167   : > { %792 = vsyncadd (!%p625_p3), %s423_s10, 4294966784  ;;  %p17_p7 = scmp.ge.s32.totalorder %s894_s24, 4   ;;  %s1073_s12 = smov %s799_s13 }
 0x168   : > { %s1074_s13 = smov %s803_s14  ;;  %s1075_s14 = smov %s925_s17 }
 0x169   : > { %s1076_s15 = smov %s894_s24  ;;  %19 = sbr.rel (!%p17_p7) target bundleno = 6 (0x6), region = 81 }
 0x170   :  { %428 = vsyncpa [#allocation3], 1 }
 0x171   :  { %430 = vsyncpa [#allocation3 + $0x1], 1 }
 0x172   :  { %431 = vsyncpa [#allocation6], 1 }
 0x173   :  { %432 = vsyncpa [#allocation4], 1 }
 0x174   :  { %434 = vsyncpa [#allocation4 + $0x1], 1 }

</bundles_post_ra>
